<compile_context>
chip_gen: v7x
topology: tpu7x:2x2x1
jax: 0.10.0
libtpu: 0.0.40
codegen_flags: <defaults>
</compile_context>

<pallas_src>
import jax
import jax.numpy as jnp
from jax.experimental import pallas as pl
from jax.experimental.pallas import tpu as pltpu

LANE = 128


def _round_up(n, m):
    return ((n + m - 1) // m) * m


def dqn_kernel(x_ref, w1_ref, w23_ref, b_ref, out_ref):
    """One batch tile: q = relu(relu(x@w1+b1)@w2+b2)@w3+b3 (bf16 MXU, f32 accumulate)."""
    x = x_ref[...]                          # (tb, S)  bf16
    w1 = w1_ref[...]                        # (S, H)   bf16
    w2 = w23_ref[0]                         # (H, H)   bf16
    w3 = w23_ref[1]                         # (H, H)   bf16
    b1 = b_ref[0:1, :]                      # (1, H)   f32
    b2 = b_ref[1:2, :]
    b3 = b_ref[2:3, :]

    h1 = jnp.dot(x, w1, preferred_element_type=jnp.float32) + b1
    h1 = jnp.maximum(h1, 0.0)                                  # ReLU in f32
    h2 = jnp.dot(h1.astype(jnp.bfloat16), w2, preferred_element_type=jnp.float32) + b2
    h2 = jnp.maximum(h2, 0.0)
    q = jnp.dot(h2.astype(jnp.bfloat16), w3, preferred_element_type=jnp.float32) + b3
    out_ref[...] = q.astype(out_ref.dtype)


def pack_params(params, lane=LANE):
    """Zero-pad all layer widths to a lane-dense multiple of 128, cast weights to bf16,
    and collapse 6 parameter buffers into 3 (w1, stacked w2/w3, stacked biases)."""
    (w1, b1), (w2, b2), (w3, b3) = params
    state_size = w1.shape[0]
    action_size = w3.shape[1]
    H = _round_up(max(w1.shape[1], w2.shape[1], action_size, lane), lane)

    def pad_w(w, rows, cols):
        z = jnp.zeros((rows, cols), jnp.float32)
        return z.at[: w.shape[0], : w.shape[1]].set(w.astype(jnp.float32))

    def pad_b(b):
        z = jnp.zeros((H,), jnp.float32)
        return z.at[: b.shape[-1]].set(b.reshape(-1).astype(jnp.float32))

    w1p = pad_w(w1, state_size, H).astype(jnp.bfloat16)                        # (S, H)
    w23 = jnp.stack([pad_w(w2, H, H), pad_w(w3, H, H)]).astype(jnp.bfloat16)   # (2, H, H)
    bias = jnp.stack([pad_b(b1), pad_b(b2), pad_b(b3)])                        # (3, H) f32
    return w1p, w23, bias, action_size


def dqn_forward(x, packed, *, tile_b=256):
    """x: (batch, state_size) f32. Returns (batch, action_size) f32 Q-values."""
    w1p, w23, bias, action_size = packed
    batch, state_size = x.shape
    H = w1p.shape[1]

    # Batch tile: up to 256 rows per grid step, rounded to sublane multiple of 8.
    tb = min(tile_b, _round_up(max(batch, 8), 8))
    padded_batch = _round_up(batch, tb)
    xp = x
    if padded_batch != batch:
        xp = jnp.pad(xp, ((0, padded_batch - batch), (0, 0)))
    xp = xp.astype(jnp.bfloat16)
    nb = padded_batch // tb

    out = pl.pallas_call(
        dqn_kernel,
        out_shape=jax.ShapeDtypeStruct((padded_batch, H), jnp.float32),
        grid=(nb,),
        in_specs=[
            pl.BlockSpec((tb, state_size), lambda i: (i, 0)),   # activations: batch-tiled
            pl.BlockSpec((state_size, H), lambda i: (0, 0)),    # weights: VMEM-resident
            pl.BlockSpec((2, H, H), lambda i: (0, 0, 0)),
            pl.BlockSpec((3, H), lambda i: (0, 0)),
        ],
        out_specs=pl.BlockSpec((tb, H), lambda i: (i, 0)),      # lane-dense (H=128) output
        compiler_params=pltpu.CompilerParams(dimension_semantics=("parallel",)),
    )(xp, w1p, w23, bias)
    return out[:batch, :action_size]


def init_dqn_params(key, state_size, action_size, hidden_sizes=(64, 64),
                    dtype=jnp.float32):
    """Torch nn.Linear-style init (U[-1/sqrt(fan_in), +]); weights stored (in, out)."""
    sizes = [state_size] + list(hidden_sizes) + [action_size]
    params = []
    for i in range(len(sizes) - 1):
        fan_in, fan_out = sizes[i], sizes[i + 1]
        key, kw, kb = jax.random.split(key, 3)
        bound = 1.0 / jnp.sqrt(jnp.asarray(fan_in, jnp.float32))
        w = jax.random.uniform(kw, (fan_in, fan_out), dtype, -bound, bound)
        b = jax.random.uniform(kb, (1, fan_out), dtype, -bound, bound)
        params.append((w, b))
    return params


def reference_forward_f32(x, params):
    h = x
    for i, (w, b) in enumerate(params):
        h = h @ w + b
        if i < len(params) - 1:
            h = jnp.maximum(h, 0.0)
    return h


def reference_forward_bf16(x, params):
    """Emulates the kernel's bf16-operand / f32-accumulate arithmetic."""
    h = x.astype(jnp.float32)
    for i, (w, b) in enumerate(params):
        h = jnp.dot(h.astype(jnp.bfloat16), w.astype(jnp.bfloat16),
                    preferred_element_type=jnp.float32) + b
        if i < len(params) - 1:
            h = jnp.maximum(h, 0.0)
    return h


if __name__ == "__main__":
    key = jax.random.PRNGKey(0)
    batch, state_size, action_size = 2, 16, 8

    key, kx = jax.random.split(key)
    x = jax.random.normal(kx, (batch, state_size), jnp.float32)
    params = init_dqn_params(key, state_size, action_size, hidden_sizes=(64, 64))
    packed = pack_params(params)

    # Small-batch run (single grid step).
    out = jax.block_until_ready(dqn_forward(x, packed))
    assert out.shape == (batch, action_size), out.shape
    ref16 = reference_forward_bf16(x, params)
    ref32 = reference_forward_f32(x, params)
    assert jnp.allclose(out, ref16, atol=1e-3, rtol=1e-3), "mismatch vs bf16 reference"
    assert jnp.allclose(out, ref32, atol=5e-2, rtol=5e-2), "mismatch vs f32 reference"

    # Larger batch exercises multi-tile grid + batch padding path.
    key, kx2 = jax.random.split(key)
    x_big = jax.random.normal(kx2, (300, state_size), jnp.float32)
    out_big = jax.block_until_ready(dqn_forward(x_big, packed))
    assert out_big.shape == (300, action_size), out_big.shape
    ref_big = reference_forward_bf16(x_big, params)
    assert jnp.allclose(out_big, ref_big, atol=1e-3, rtol=1e-3), "mismatch (batched)"

    print("KERNEL_OK")
</pallas_src>

<mosaic_0001>
module attributes {stable_mosaic.version = 11 : i64} {
  func.func @dqn_kernel(%arg0: i32, %arg1: memref<8x16xbf16, #tpu.memory_space<vmem>>, %arg2: memref<16x128xbf16, #tpu.memory_space<vmem>>, %arg3: memref<2x128x128xbf16, #tpu.memory_space<vmem>>, %arg4: memref<3x128xf32, #tpu.memory_space<vmem>>, %arg5: memref<8x128xf32, #tpu.memory_space<vmem>>) attributes {dimension_semantics = [#tpu.dimension_semantics<parallel>], iteration_bounds = array<i64: 1>, scalar_prefetch = 0 : i64, scratch_operands = 0 : i64, tpu.core_type = #tpu.core_type<tc>, window_params = [{transform_indices = @transform_0, window_bounds = array<i64: 8, 16>}, {pipeline_mode = #tpu.pipeline_mode<synchronous>, transform_indices = @transform_1, window_bounds = array<i64: 16, 128>}, {pipeline_mode = #tpu.pipeline_mode<synchronous>, transform_indices = @transform_2, window_bounds = array<i64: 2, 128, 128>}, {pipeline_mode = #tpu.pipeline_mode<synchronous>, transform_indices = @transform_3, window_bounds = array<i64: 3, 128>}, {transform_indices = @transform_4, window_bounds = array<i64: 8, 128>}]} {
    %c0 = arith.constant 0 : index
    %c0_0 = arith.constant 0 : index
    %0 = vector.load %arg1[%c0, %c0_0] : memref<8x16xbf16, #tpu.memory_space<vmem>>, vector<8x16xbf16>
    %c0_1 = arith.constant 0 : index
    %c0_2 = arith.constant 0 : index
    %1 = vector.load %arg2[%c0_1, %c0_2] : memref<16x128xbf16, #tpu.memory_space<vmem>>, vector<16x128xbf16>
    %c0_3 = arith.constant 0 : index
    %c0_4 = arith.constant 0 : index
    %c0_5 = arith.constant 0 : index
    %2 = vector.load %arg3[%c0_3, %c0_4, %c0_5] : memref<2x128x128xbf16, #tpu.memory_space<vmem>>, vector<1x128x128xbf16>
    %3 = vector.shape_cast %2 : vector<1x128x128xbf16> to vector<128x128xbf16>
    %c1 = arith.constant 1 : index
    %c0_6 = arith.constant 0 : index
    %c0_7 = arith.constant 0 : index
    %4 = vector.load %arg3[%c1, %c0_6, %c0_7] : memref<2x128x128xbf16, #tpu.memory_space<vmem>>, vector<1x128x128xbf16>
    %5 = vector.shape_cast %4 : vector<1x128x128xbf16> to vector<128x128xbf16>
    %c0_8 = arith.constant 0 : index
    %c0_9 = arith.constant 0 : index
    %6 = vector.load %arg4[%c0_8, %c0_9] : memref<3x128xf32, #tpu.memory_space<vmem>>, vector<1x128xf32>
    %c1_10 = arith.constant 1 : index
    %c0_11 = arith.constant 0 : index
    %7 = vector.load %arg4[%c1_10, %c0_11] : memref<3x128xf32, #tpu.memory_space<vmem>>, vector<1x128xf32>
    %c2 = arith.constant 2 : index
    %c0_12 = arith.constant 0 : index
    %8 = vector.load %arg4[%c2, %c0_12] : memref<3x128xf32, #tpu.memory_space<vmem>>, vector<1x128xf32>
    %cst = arith.constant dense<0.000000e+00> : vector<8x128xf32>
    %9 = tpu.matmul %0, %1, %cst {dimension_numbers = #tpu.dot_dimension_numbers<[1], [0], [0], [1], [0, 0, 1, 1], [], []>} : vector<8x16xbf16>, vector<16x128xbf16>, vector<8x128xf32> -> vector<8x128xf32>
    %10 = vector.broadcast %6 : vector<1x128xf32> to vector<8x128xf32>
    %11 = arith.addf %9, %10 : vector<8x128xf32>
    %cst_13 = arith.constant 0.000000e+00 : f32
    %12 = vector.broadcast %cst_13 : f32 to vector<8x128xf32>
    %13 = arith.maximumf %11, %12 : vector<8x128xf32>
    %14 = arith.truncf %13 : vector<8x128xf32> to vector<8x128xbf16>
    %cst_14 = arith.constant dense<0.000000e+00> : vector<8x128xf32>
    %15 = tpu.matmul %14, %3, %cst_14 {dimension_numbers = #tpu.dot_dimension_numbers<[1], [0], [0], [1], [0, 0, 1, 1], [], []>} : vector<8x128xbf16>, vector<128x128xbf16>, vector<8x128xf32> -> vector<8x128xf32>
    %16 = vector.broadcast %7 : vector<1x128xf32> to vector<8x128xf32>
    %17 = arith.addf %15, %16 : vector<8x128xf32>
    %cst_15 = arith.constant 0.000000e+00 : f32
    %18 = vector.broadcast %cst_15 : f32 to vector<8x128xf32>
    %19 = arith.maximumf %17, %18 : vector<8x128xf32>
    %20 = arith.truncf %19 : vector<8x128xf32> to vector<8x128xbf16>
    %cst_16 = arith.constant dense<0.000000e+00> : vector<8x128xf32>
    %21 = tpu.matmul %20, %5, %cst_16 {dimension_numbers = #tpu.dot_dimension_numbers<[1], [0], [0], [1], [0, 0, 1, 1], [], []>} : vector<8x128xbf16>, vector<128x128xbf16>, vector<8x128xf32> -> vector<8x128xf32>
    %22 = vector.broadcast %8 : vector<1x128xf32> to vector<8x128xf32>
    %23 = arith.addf %21, %22 : vector<8x128xf32>
    %c0_17 = arith.constant 0 : index
    %c0_18 = arith.constant 0 : index
    %24 = vector.load %arg5[%c0_17, %c0_18] : memref<8x128xf32, #tpu.memory_space<vmem>>, vector<8x128xf32>
    tpu.vector_store %arg5[%c0_17, %c0_18], %23 {strides = array<i32>} : memref<8x128xf32, #tpu.memory_space<vmem>>, vector<8x128xf32>,
    return
  }
  func.func @transform_0(%arg0: i32) -> (i32, i32) {
    %c0_i32 = arith.constant 0 : i32
    %c0_i32_0 = arith.constant 0 : i32
    return %arg0, %c0_i32 : i32, i32
  }
  func.func @transform_1(%arg0: i32) -> (i32, i32) {
    %c0_i32 = arith.constant 0 : i32
    %c0_i32_0 = arith.constant 0 : i32
    %c0_i32_1 = arith.constant 0 : i32
    return %c0_i32, %c0_i32_0 : i32, i32
  }
  func.func @transform_2(%arg0: i32) -> (i32, i32, i32) {
    %c0_i32 = arith.constant 0 : i32
    %c0_i32_0 = arith.constant 0 : i32
    %c0_i32_1 = arith.constant 0 : i32
    %c0_i32_2 = arith.constant 0 : i32
    return %c0_i32, %c0_i32_0, %c0_i32_1 : i32, i32, i32
  }
  func.func @transform_3(%arg0: i32) -> (i32, i32) {
    %c0_i32 = arith.constant 0 : i32
    %c0_i32_0 = arith.constant 0 : i32
    %c0_i32_1 = arith.constant 0 : i32
    return %c0_i32, %c0_i32_0 : i32, i32
  }
  func.func @transform_4(%arg0: i32) -> (i32, i32) {
    %c0_i32 = arith.constant 0 : i32
    %c0_i32_0 = arith.constant 0 : i32
    return %arg0, %c0_i32 : i32, i32
  }
}

</mosaic_0001>

<bundles_post_ra>
// kernel: tpu_custom_call.1
= control target key start
LH: loop header
LB: loop body
LE: loop exit
PB: predicated region body
PF: predicated region fallthrough
CT: control target
= control target key end

     0   :  { %9 = vsyncpa [#allocation3], 0  ;;  %s678_s0 = inlined_call_operand.hbm [shape: bf16[8,16], index: 0, kind: input, shape index: {}]   ;;  %s679_s1 = inlined_call_operand.hbm [shape: bf16[16,128], index: 1, kind: input, shape index: {}]   ;;  %s680_s2 = inlined_call_operand.hbm [shape: bf16[2,128,128], index: 2, kind: input, shape index: {}]   ;;  %s681_s3 = inlined_call_operand.vmem [shape: f32[3,128], index: 3, kind: input, shape index: {}]   ;;  %s682_s4 = inlined_call_operand.hbm [shape: f32[8,128], index: 4, kind: output, shape index: {}]  }
   0x1   :  { %10 = vsyncpa [#allocation6], 0 }
   0x2   :  { %11 = vsyncpa [#allocation4], 0  ;;  %s562_s15 = smov [#allocation5]   ;;  %s468_s19 = scalar_lea.hbm %s679_s1, 128 }
   0x3   :  { %s27_s16 = sshll.u32 %s562_s15, 4  ;;  %p469_p0 = scmp.ne.s32.totalorder %s679_s1, %s468_s19  ;;  %s28_s16 = int_to_ptr.vmem [resolvable:$true] %s27_s16 }
   0x4   :  { %p472_p1 = scmp.lt.u32.totalorder %s468_s19, %s679_s1 }
   0x6   :  { %p474_p2 = pnand %p472_p1, %p469_p0 }
   0x8   :  { %477 = shalt.err (!%p474_p2)
}
   0x9   :  { %s478_s24 = scalar_lea.vmem %s28_s16, 128  ;;  %p483_p4 = scmp.lt.s32.totalorder %s28_s16, %s28_s16 }
   0xa   :  { %p479_p3 = scmp.ne.s32.totalorder %s28_s16, %s478_s24  ;;  %p484_p5 = scmp.lt.s32.totalorder %s478_s24, %s478_s24 }
   0xc   :  { %p485_p6 = por %p484_p5, %p483_p4 }
   0xe   :  { %p486_p7 = pnand %p485_p6, %p479_p3 }
  0x10   :  { %489 = shalt.err (!%p486_p7)
}
  0x11   :  { %s563_s25 = smov 64   ;;  %s564_s26 = smov 4  }
  0x12   :  { %33 = dma.hbm_to_vmem [thread:$0]  %s679_s1, 128, %s28_s16, [#allocation6], %s563_s25, %s563_s25, %s564_s26  }
  0x13   :  { %s565_s29 = smov [#allocation2]   ;;  %s566_s5 = smov [#allocation7]  }
  0x14   :  { %s18_s30 = sshll.u32 %s565_s29, 4  ;;  %s39_s6 = sshll.u32 %s566_s5, 4  ;;  %s19_s30 = int_to_ptr.vmem [resolvable:$true] %s18_s30  ;;  %s40_s6 = int_to_ptr.vmem [resolvable:$true] %s39_s6 }
  0x15   :  { %s490_s9 = scalar_lea.hbm %s678_s0, 64 }
  0x16   :  { %p491_p8 = scmp.ne.s32.totalorder %s678_s0, %s490_s9  ;;  %p494_p9 = scmp.lt.u32.totalorder %s490_s9, %s678_s0 }
  0x18   :  { %p496_p10 = pnand %p494_p9, %p491_p8 }
  0x1a   :  { %499 = shalt.err (!%p496_p10)
}
  0x1b   :  { %s500_s1 = scalar_lea.vmem %s19_s30, 64  ;;  %p505_p12 = scmp.lt.s32.totalorder %s19_s30, %s19_s30 }
  0x1c   :  { %p501_p11 = scmp.ne.s32.totalorder %s19_s30, %s500_s1  ;;  %p506_p13 = scmp.lt.s32.totalorder %s500_s1, %s500_s1 }
  0x1e   :  { %p507_p0 = por %p506_p13, %p505_p12 }
  0x20   :  { %p508_p1 = pnand %p507_p0, %p501_p11 }
  0x22   :  { %511 = shalt.err (!%p508_p1)
}
  0x23   :  { %21 = dma.hbm_to_vmem [thread:$0]  %s678_s0, 64, %s19_s30, [#allocation3]  }
  0x24   :  { %s512_s18 = scalar_lea.hbm %s680_s2, 2048 }
  0x25   :  { %p513_p2 = scmp.ne.s32.totalorder %s680_s2, %s512_s18  ;;  %p516_p3 = scmp.lt.u32.totalorder %s512_s18, %s680_s2 }
  0x27   :  { %p518_p4 = pnand %p516_p3, %p513_p2 }
  0x29   :  { %521 = shalt.err (!%p518_p4)
}
  0x2a   :  { %s522_s23 = scalar_lea.vmem %s40_s6, 2048  ;;  %p527_p6 = scmp.lt.s32.totalorder %s40_s6, %s40_s6 }
  0x2b   :  { %p523_p5 = scmp.ne.s32.totalorder %s40_s6, %s522_s23  ;;  %p528_p7 = scmp.lt.s32.totalorder %s522_s23, %s522_s23 }
  0x2d   :  { %p529_p8 = por %p528_p7, %p527_p6 }
  0x2f   :  { %p530_p9 = pnand %p529_p8, %p523_p5 }
  0x31   :  { %533 = shalt.err (!%p530_p9)
}
  0x32   :  { %45 = dma.hbm_to_vmem [thread:$0]  %s680_s2, 2048, %s40_s6, [#allocation6], %s563_s25, %s563_s25, %s564_s26  }
  0x33   :  { %556 = dma.done.wait [#allocation3], 64  }
  0x34   :  { %557 = vsyncadd [#allocation3], 4294967232 }
  0x35   :  { %558 = dma.done.wait [#allocation6], 2176  }
  0x36   :  { %559 = vsyncadd [#allocation6], 4294965120  ;;  %v567_v0 = vmov 0.0   ;;  %vm568_vm0 = vmmov 0   ;;  %v451_v1 = vld [vmem:[#allocation5] sm:$0xff]   ;;  %vm107_vm1 = vcmask 130048  }
  0x37   :  { %397 = vmatprep.subr.bf16.mxu0 %v567_v0  ;;  %399 = vmatprep.mubr.msk.bf16.mxu0 %vm568_vm0, %v567_v0  ;;  %v58_v2 = vld [vmem:[#allocation2] sm:$0xf]  ;;  %v452_v3 = vld [vmem:[#allocation7] sm:$0xff]   ;;  %v453_v4 = vld [vmem:[#allocation7 + $0x8] sm:$0xff]   ;;  %s569_s30 = smov [#allocation8]  }
  0x38   :  { %403 = vmatprep.subr.bf16.mxu1 %v567_v0  ;;  %419 = vmatprep.mubr.msk.bf16.mxu1 %vm568_vm0, %v567_v0  ;;  %v454_v5 = vld [vmem:[#allocation7 + $0x10] sm:$0xff]   ;;  %v455_v6 = vld [vmem:[#allocation7 + $0x18] sm:$0xff]   ;;  %v456_v7 = vld [vmem:[#allocation7 + $0x20] sm:$0xff]   ;;  %s346_s5 = sshll.u32 %s569_s30, 4  ;;  %s347_s5 = int_to_ptr.vmem [resolvable:$true] %s346_s5 }
  0x39   :  { %398 = vmatpush3.bf16.msra.mxu0 %v451_v1  ;;  %404 = vmatpush3.bf16.msra.mxu1 %v452_v3  ;;  %v457_v8 = vld [vmem:[#allocation7 + $0x28] sm:$0xff]   ;;  %v458_v9 = vld [vmem:[#allocation7 + $0x30] sm:$0xff]   ;;  %v459_v10 = vld [vmem:[#allocation7 + $0x38] sm:$0xff]   ;;  %s534_s6 = scalar_lea.vmem %s347_s5, 128  ;;  %p539_p11 = scmp.lt.s32.totalorder %s347_s5, %s347_s5 }
  0x3a   :  { %423 = vmatprep.subr.bf16.mxu0 %v567_v0  ;;  %405 = vmatprep.subr.bf16.mxu1 %v567_v0  ;;  %v460_v11 = vld [vmem:[#allocation7 + $0x40] sm:$0xff]   ;;  %v461_v12 = vld [vmem:[#allocation7 + $0x48] sm:$0xff]   ;;  %v462_v13 = vld [vmem:[#allocation7 + $0x50] sm:$0xff]   ;;  %p535_p10 = scmp.ne.s32.totalorder %s347_s5, %s534_s6  ;;  %p540_p12 = scmp.lt.s32.totalorder %s534_s6, %s534_s6 }
  0x3b   :  { %v463_v14 = vld [vmem:[#allocation7 + $0x58] sm:$0xff]   ;;  %v464_v15 = vld [vmem:[#allocation7 + $0x60] sm:$0xff]   ;;  %v465_v16 = vld [vmem:[#allocation7 + $0x68] sm:$0xff]  }
  0x3c   :  { %400 = vmatmul.mubr.msk.bf16.vlgmr.msra.gmra.mrb[0].mxu0 %vm107_vm1, %v58_v2  ;;  %v356_v17 = vld [vmem:[%s681_s3] ss:$0 sm:$0xff]  ;;  %v467_v26 = vld [vmem:[#allocation7 + $0x78] sm:$0xff]   ;;  %v359_v27 = vld [vmem:[%s681_s3 + $0x1] ss:$0 sm:$0xff]  ;;  %p541_p13 = por %p540_p12, %p539_p11 }
  0x3d   :  { %439 = vmatprep.mubr.msk.bf16.mxu0 %vm568_vm0, %v567_v0  ;;  %406 = vmatpush3.bf16.msra.mxu1 %v453_v4  ;;  %v466_v25 = vld [vmem:[#allocation7 + $0x70] sm:$0xff]  }
  0x3e   :  { %407 = vmatprep.subr.bf16.mxu1 %v567_v0  ;;  %424 = vmatpush3.bf16.msra.mxu0 %v460_v11  ;;  %v368_v35 = vld [vmem:[%s681_s3 + $0x2] ss:$0 sm:$0xff]  ;;  %p542_p0 = pnand %p541_p13, %p535_p10 }
  0x3f   :  { %425 = vmatprep.subr.bf16.mxu0 %v567_v0 }
  0x41   :  { %408 = vmatpush3.bf16.msra.mxu1 %v454_v5 }
  0x42   :  { %409 = vmatprep.subr.bf16.mxu1 %v567_v0  ;;  %426 = vmatpush3.bf16.msra.mxu0 %v461_v12 }
  0x43   :  { %427 = vmatprep.subr.bf16.mxu0 %v567_v0 }
  0x45   :  { %410 = vmatpush3.bf16.msra.mxu1 %v455_v6 }
  0x46   :  { %411 = vmatprep.subr.bf16.mxu1 %v567_v0  ;;  %428 = vmatpush3.bf16.msra.mxu0 %v462_v13 }
  0x47   :  { %429 = vmatprep.subr.bf16.mxu0 %v567_v0 }
  0x49   :  { %412 = vmatpush3.bf16.msra.mxu1 %v456_v7 }
  0x4a   :  { %413 = vmatprep.subr.bf16.mxu1 %v567_v0  ;;  %430 = vmatpush3.bf16.msra.mxu0 %v463_v14 }
  0x4b   :  { %431 = vmatprep.subr.bf16.mxu0 %v567_v0 }
  0x4d   :  { %414 = vmatpush3.bf16.msra.mxu1 %v457_v8 }
  0x4e   :  { %415 = vmatprep.subr.bf16.mxu1 %v567_v0  ;;  %432 = vmatpush3.bf16.msra.mxu0 %v464_v15 }
  0x4f   :  { %433 = vmatprep.subr.bf16.mxu0 %v567_v0 }
  0x51   :  { %416 = vmatpush3.bf16.msra.mxu1 %v458_v9 }
  0x52   :  { %417 = vmatprep.subr.bf16.mxu1 %v567_v0  ;;  %434 = vmatpush3.bf16.msra.mxu0 %v465_v16 }
  0x53   :  { %435 = vmatprep.subr.bf16.mxu0 %v567_v0 }
  0x55   :  { %418 = vmatpush3.bf16.msra.mxu1 %v459_v10 }
  0x56   :  { %436 = vmatpush3.bf16.msra.mxu0 %v466_v25 }
  0x57   :  { %437 = vmatprep.subr.bf16.mxu0 %v567_v0 }
  0x5a   :  { %438 = vmatpush3.bf16.msra.mxu0 %v467_v26 }
 0x10f   :  { %v145_v18 = vpop.f32.mrb[0].mxu0 }
 0x110   :  { %v146_v19 = vadd.f32 %v356_v17, %v145_v18  ;;  %v401_v20 = vpop.f32.mrb[1].mxu0 }
 0x111   :  { %v148_v21 = vpop.f32.mrb[2].mxu0 }
 0x112   :  { %v151_v22 = vmax.f32 %v146_v19, 0.0  ;;  %v402_v23 = vpop.f32.mrb[3].mxu0 }
 0x114   :  { %v152_v24 = vpack.c.bf16 %v151_v22, %v151_v22 }
 0x116   :  { %420 = vmatmul.mubr.bf16.vlgmr.msra.gmra.mrb[0].mxu1 %v152_v24 }
 0x1e9   :  { %v239_v28 = vpop.f32.mrb[0].mxu1 }
 0x1ea   :  { %v240_v29 = vadd.f32 %v359_v27, %v239_v28  ;;  %v421_v30 = vpop.f32.mrb[1].mxu1 }
 0x1eb   :  { %v242_v31 = vpop.f32.mrb[2].mxu1 }
 0x1ec   :  { %v245_v32 = vmax.f32 %v240_v29, 0.0  ;;  %v422_v33 = vpop.f32.mrb[3].mxu1 }
 0x1ee   :  { %v246_v34 = vpack.c.bf16 %v245_v32, %v245_v32 }
 0x1f0   :  { %440 = vmatmul.mubr.bf16.vlgmr.msra.gmra.mrb[4].mxu0 %v246_v34 }
 0x2c3   :  { %v333_v36 = vpop.f32.mrb[4].mxu0 }
 0x2c4   :  { %v334_v37 = vadd.f32 %v368_v35, %v333_v36  ;;  %v441_v38 = vpop.f32.mrb[5].mxu0 }
 0x2c5   :  { %v336_v39 = vpop.f32.mrb[6].mxu0 }
 0x2c6   :  { %339 = vst [vmem:[#allocation8] sm:$0xff] %v334_v37  ;;  %v442_v40 = vpop.f32.mrb[7].mxu0 }
 0x2c7   :  { %545 = shalt.err (!%p542_p0)
}
 0x2c8   :  { %s546_s3 = scalar_lea.hbm %s682_s4, 128 }
 0x2c9   :  { %p547_p1 = scmp.ne.s32.totalorder %s682_s4, %s546_s3  ;;  %p550_p2 = scmp.lt.u32.totalorder %s546_s3, %s682_s4 }
 0x2cb   :  { %p552_p3 = pnand %p550_p2, %p547_p1 }
 0x2cd   :  { %555 = shalt.err (!%p552_p3)
}
 0x2ce   :  { %349 = dma.vmem_to_hbm [thread:$0]  %s347_s5, 128, %s682_s4, [#allocation4]  }
 0x2cf   :  { %560 = dma.done.wait [#allocation4], 128  }
 0x2d0   :  { %561 = vsyncadd [#allocation4], 4294967168 }
 0x2d1   :  { %353 = vsyncpa [#allocation3], 1 }
 0x2d2   :  { %354 = vsyncpa [#allocation6], 1 }
 0x2d3   :  { %355 = vsyncpa [#allocation4], 1 }

</bundles_post_ra>
